<compile_context>
chip_gen: v5e
topology: v5e:2x2
jax: 0.10.0
libtpu: 0.0.40
codegen_flags: <defaults>
</compile_context>

<pallas_src>
import jax
import jax.numpy as jnp
from jax.experimental import pallas as pl
from jax.experimental.pallas import tpu as pltpu


def _embed_terms_kernel(bounds_ref, x_ref, w1_ref, b1_ref, w2_ref, b2_ref, out_ref):
    """Fused TermEncoder MLP + embed_terms flag-prefix construction.

    bounds_ref : SMEM [2] int32  -> (env_end, ctx_end)
    x_ref      : [TM, F]   bf16 per-term features (row tile)
    w1_ref     : [F, H]    bf16,  b1_ref: [1, H]    f32
    w2_ref     : [H, Dout] bf16 (3 leading zero cols + zero tail padding)
    b2_ref     : [1, Dout] f32  (3 leading zero cols + zero tail padding)
    out_ref    : [TM, Dout] bf16,  Dout is a multiple of 128
    """
    tm = out_ref.shape[0]
    dout = out_ref.shape[1]

    # --- TermEncoder: 2-layer MLP on the MXU (f32 accumulation) ---
    h = jnp.dot(x_ref[...], w1_ref[...], preferred_element_type=jnp.float32)
    h = jnp.maximum(h + b1_ref[...], 0.0)
    e = jnp.dot(h.astype(w2_ref.dtype), w2_ref[...],
                preferred_element_type=jnp.float32) + b2_ref[...]

    # --- embed_terms: one-hot kind flags from scalar-prefetched boundaries ---
    env_end = bounds_ref[0]
    ctx_end = bounds_ref[1]

    row = pl.program_id(0) * tm + jax.lax.broadcasted_iota(jnp.int32, (tm, 1), 0)
    kind = jnp.where(row < env_end, 0, jnp.where(row < ctx_end, 1, 2))
    col = jax.lax.broadcasted_iota(jnp.int32, (tm, dout), 1)
    flags = (col == kind).astype(jnp.float32)   # padded rows are sliced off later

    # Single lane-dense, unmasked full-width bf16 store (flag lanes of `e` are 0).
    out_ref[...] = (e + flags).astype(out_ref.dtype)


def _choose_tm(n, cap=1024):
    """Adaptive row tile: multiple of 16, capped, and (when possible) sized so
    the grid has >=2 steps for 2-TC sharding on v7x."""
    tm = min(cap, pl.cdiv(n, 16) * 16)
    if pl.cdiv(n, tm) < 2 and n > 16:
        tm = pl.cdiv(pl.cdiv(n, 2), 16) * 16
    return max(tm, 16)


def embed_terms_pallas(x, bounds, w1, b1, w2p, b2p, *, tm):
    """x: [Npad, F] bf16 (Npad % tm == 0); bounds: [2] int32.

    Returns [Npad, Dout] bf16 with the flag one-hot in lanes 0..2 and the
    embedding in lanes 3..(3+D).
    """
    n, f = x.shape
    h = w1.shape[1]
    dout = w2p.shape[1]
    assert n % tm == 0 and dout % 128 == 0 and tm % 16 == 0

    # VMEM budget: double-buffered x/out tiles (both bf16) + resident weights
    # + headroom for compiler temporaries.
    dbuf = 2 * (tm * f * 2 + tm * dout * 2)
    wts = (f * h + h * dout) * 2 + (h + dout) * 4
    vmem_limit = int(dbuf + wts + (16 << 20))

    grid_spec = pltpu.PrefetchScalarGridSpec(
        num_scalar_prefetch=1,
        grid=(n // tm,),
        in_specs=[
            pl.BlockSpec((tm, f), lambda i, b: (i, 0)),
            pl.BlockSpec((f, h), lambda i, b: (0, 0)),
            pl.BlockSpec((1, h), lambda i, b: (0, 0)),
            pl.BlockSpec((h, dout), lambda i, b: (0, 0)),
            pl.BlockSpec((1, dout), lambda i, b: (0, 0)),
        ],
        out_specs=pl.BlockSpec((tm, dout), lambda i, b: (i, 0)),
    )

    return pl.pallas_call(
        _embed_terms_kernel,
        out_shape=jax.ShapeDtypeStruct((n, dout), jnp.bfloat16),
        grid_spec=grid_spec,
        compiler_params=pltpu.CompilerParams(
            dimension_semantics=("parallel",),
            vmem_limit_bytes=vmem_limit,
        ),
    )(bounds, x, w1, b1, w2p, b2p)


def prepare_prover_params(params):
    """One-time parameter prep: fold the 3-wide flag prefix into the 2nd
    matmul's output layout and cast MXU inputs to bf16. Call once, reuse."""
    w1, b1, w2, b2 = params
    d = w2.shape[1]
    dout = ((3 + d + 127) // 128) * 128     # lane-dense output width
    w2p = jnp.zeros((w2.shape[0], dout), jnp.float32).at[:, 3:3 + d].set(w2)
    b2p = jnp.zeros((1, dout), jnp.float32).at[:, 3:3 + d].set(b2.reshape(1, -1))
    return (w1.astype(jnp.bfloat16),
            b1.reshape(1, -1).astype(jnp.float32),
            w2p.astype(jnp.bfloat16),
            b2p.astype(jnp.float32),
            d)


def prover_embed_terms(environment_feats, context_feats, goal_feats, prepared,
                       *, tm_cap=1024):
    """Mirrors Prover.embed_terms.

    environment_feats : list (len=batch) of [size_n, F] arrays
    context_feats     : list (len=batch) of [size_n, F] arrays
    goal_feats        : [batch, F] array
    prepared          : output of prepare_prover_params(params)
    Returns (environment_embeddings, context_embeddings, goal_embeddings)
      environment_embeddings : list of [size_n, 3+D], column 0 == 1.0
      context_embeddings     : list of [size_n, 3+D], column 1 == 1.0
      goal_embeddings        : [batch, 3+D],          column 2 == 1.0
    """
    w1b, b1f, w2p, b2p, d = prepared
    batchsize = len(environment_feats)
    f = goal_feats.shape[1]

    env_sizes = [a.shape[0] for a in environment_feats]
    ctx_sizes = [a.shape[0] for a in context_feats]
    n_env, n_ctx = sum(env_sizes), sum(ctx_sizes)
    n = n_env + n_ctx + batchsize

    tm = _choose_tm(n, cap=tm_cap)
    n_pad = pl.cdiv(n, tm) * tm

    # Order matches the PyTorch chain(): all env terms, all ctx terms, all
    # goals.  Cast each piece to bf16 and fold the row padding into the same
    # single concatenate -> x is materialized exactly once in HBM.
    parts = ([a.astype(jnp.bfloat16) for a in environment_feats]
             + [a.astype(jnp.bfloat16) for a in context_feats]
             + [goal_feats.astype(jnp.bfloat16)])
    if n_pad > n:
        parts.append(jnp.zeros((n_pad - n, f), jnp.bfloat16))
    x_p = jnp.concatenate(parts, axis=0)

    # Segment boundaries replace the per-row kind stream (scalar prefetch).
    bounds = jnp.array([n_env, n_env + n_ctx], jnp.int32)

    all_emb = embed_terms_pallas(x_p, bounds, w1b, b1f, w2p, b2p,
                                 tm=tm)[:n, :3 + d]

    environment_embeddings, context_embeddings = [], []
    j = 0
    for s in env_sizes:
        environment_embeddings.append(all_emb[j:j + s])
        j += s
    for s in ctx_sizes:
        context_embeddings.append(all_emb[j:j + s])
        j += s
    goal_embeddings = all_emb[j:j + batchsize]
    return environment_embeddings, context_embeddings, goal_embeddings


def _reference(environment_feats, context_feats, goal_feats, params):
    """Plain-JAX f32 reference reproducing the PyTorch embed_terms semantics."""
    w1, b1, w2, b2 = params

    def enc(x):
        h = jnp.maximum(x @ w1 + b1, 0.0)
        return h @ w2 + b2

    env_out, ctx_out = [], []
    for a in environment_feats:
        e = enc(a)
        out = jnp.concatenate([jnp.zeros((a.shape[0], 3)), e], axis=1)
        env_out.append(out.at[:, 0].set(1.0))
    for a in context_feats:
        e = enc(a)
        out = jnp.concatenate([jnp.zeros((a.shape[0], 3)), e], axis=1)
        ctx_out.append(out.at[:, 1].set(1.0))
    eg = enc(goal_feats)
    g = jnp.concatenate([jnp.zeros((goal_feats.shape[0], 3)), eg], axis=1)
    g = g.at[:, 2].set(1.0)
    return env_out, ctx_out, g


if __name__ == "__main__":
    key = jax.random.PRNGKey(0)

    # Small, module-consistent shapes.
    F = 32    # per-term (flattened AST) feature dim
    H = 64    # encoder hidden dim
    D = 125   # term_embedding_dim  -> output channels = 3 + D = 128
    batch = 2
    env_sizes = [3, 2]   # terms in each environment
    ctx_sizes = [2, 2]   # terms in each local context

    k1, k2, k3, k4, k5, k6, k7 = jax.random.split(key, 7)
    w1 = jax.random.normal(k1, (F, H), jnp.float32) * 0.1
    b1 = jax.random.normal(k2, (1, H), jnp.float32) * 0.1
    w2 = jax.random.normal(k3, (H, D), jnp.float32) * 0.1
    b2 = jax.random.normal(k4, (1, D), jnp.float32) * 0.1
    params = (w1, b1, w2, b2)

    env_feats = [jax.random.normal(jax.random.fold_in(k5, i), (s, F), jnp.float32)
                 for i, s in enumerate(env_sizes)]
    ctx_feats = [jax.random.normal(jax.random.fold_in(k6, i), (s, F), jnp.float32)
                 for i, s in enumerate(ctx_sizes)]
    goal_feats = jax.random.normal(k7, (batch, F), jnp.float32)

    # One-time parameter prep (cached/reused across calls).
    prepared = prepare_prover_params(params)

    env_e, ctx_e, goal_e = prover_embed_terms(env_feats, ctx_feats, goal_feats,
                                              prepared)
    jax.block_until_ready(goal_e)

    # Correctness check (bf16 MXU inputs + bf16 output -> loosened tolerance on
    # embeddings; flag columns are exact by construction: 0.0/1.0 in bf16).
    env_r, ctx_r, goal_r = _reference(env_feats, ctx_feats, goal_feats, params)
    for a, b in zip(env_e, env_r):
        assert jnp.allclose(a[:, :3].astype(jnp.float32), b[:, :3], atol=1e-6), \
            "env flags mismatch"
        assert jnp.allclose(a[:, 3:].astype(jnp.float32), b[:, 3:], atol=5e-2), \
            "env embeddings mismatch"
    for a, b in zip(ctx_e, ctx_r):
        assert jnp.allclose(a[:, :3].astype(jnp.float32), b[:, :3], atol=1e-6), \
            "ctx flags mismatch"
        assert jnp.allclose(a[:, 3:].astype(jnp.float32), b[:, 3:], atol=5e-2), \
            "ctx embeddings mismatch"
    assert jnp.allclose(goal_e[:, :3].astype(jnp.float32), goal_r[:, :3],
                        atol=1e-6), "goal flags mismatch"
    assert jnp.allclose(goal_e[:, 3:].astype(jnp.float32), goal_r[:, 3:],
                        atol=5e-2), "goal embeddings mismatch"
    assert goal_e.shape == (batch, 3 + D)

    print("KERNEL_OK")
</pallas_src>

<mosaic_0001>
module attributes {stable_mosaic.version = 11 : i64} {
  func.func @_embed_terms_kernel(%arg0: i32, %arg1: memref<2xi32, #tpu.memory_space<smem>>, %arg2: memref<16x32xbf16, #tpu.memory_space<vmem>>, %arg3: memref<32x64xbf16, #tpu.memory_space<vmem>>, %arg4: memref<1x64xf32, #tpu.memory_space<vmem>>, %arg5: memref<64x128xbf16, #tpu.memory_space<vmem>>, %arg6: memref<1x128xf32, #tpu.memory_space<vmem>>, %arg7: memref<16x128xbf16, #tpu.memory_space<vmem>>) attributes {dimension_semantics = [#tpu.dimension_semantics<parallel>], iteration_bounds = array<i64: 1>, scalar_prefetch = 1 : i64, scratch_operands = 0 : i64, tpu.core_type = #tpu.core_type<tc>, window_params = [{transform_indices = @transform_0, window_bounds = array<i64: 16, 32>}, {pipeline_mode = #tpu.pipeline_mode<synchronous>, transform_indices = @transform_1, window_bounds = array<i64: 32, 64>}, {pipeline_mode = #tpu.pipeline_mode<synchronous>, transform_indices = @transform_2, window_bounds = array<i64: 1, 64>}, {pipeline_mode = #tpu.pipeline_mode<synchronous>, transform_indices = @transform_3, window_bounds = array<i64: 64, 128>}, {pipeline_mode = #tpu.pipeline_mode<synchronous>, transform_indices = @transform_4, window_bounds = array<i64: 1, 128>}, {transform_indices = @transform_5, window_bounds = array<i64: 16, 128>}]} {
    %c0 = arith.constant 0 : index
    %c0_0 = arith.constant 0 : index
    %0 = vector.load %arg2[%c0, %c0_0] : memref<16x32xbf16, #tpu.memory_space<vmem>>, vector<16x32xbf16>
    %c0_1 = arith.constant 0 : index
    %c0_2 = arith.constant 0 : index
    %1 = vector.load %arg3[%c0_1, %c0_2] : memref<32x64xbf16, #tpu.memory_space<vmem>>, vector<32x64xbf16>
    %cst = arith.constant dense<0.000000e+00> : vector<16x64xf32>
    %2 = tpu.matmul %0, %1, %cst {dimension_numbers = #tpu.dot_dimension_numbers<[1], [0], [0], [1], [0, 0, 1, 1], [], []>} : vector<16x32xbf16>, vector<32x64xbf16>, vector<16x64xf32> -> vector<16x64xf32>
    %c0_3 = arith.constant 0 : index
    %c0_4 = arith.constant 0 : index
    %3 = vector.load %arg4[%c0_3, %c0_4] : memref<1x64xf32, #tpu.memory_space<vmem>>, vector<1x64xf32>
    %4 = vector.broadcast %3 : vector<1x64xf32> to vector<16x64xf32>
    %5 = arith.addf %2, %4 : vector<16x64xf32>
    %cst_5 = arith.constant 0.000000e+00 : f32
    %6 = vector.broadcast %cst_5 : f32 to vector<16x64xf32>
    %7 = arith.maximumf %5, %6 : vector<16x64xf32>
    %8 = arith.truncf %7 : vector<16x64xf32> to vector<16x64xbf16>
    %c0_6 = arith.constant 0 : index
    %c0_7 = arith.constant 0 : index
    %9 = vector.load %arg5[%c0_6, %c0_7] : memref<64x128xbf16, #tpu.memory_space<vmem>>, vector<64x128xbf16>
    %cst_8 = arith.constant dense<0.000000e+00> : vector<16x128xf32>
    %10 = tpu.matmul %8, %9, %cst_8 {dimension_numbers = #tpu.dot_dimension_numbers<[1], [0], [0], [1], [0, 0, 1, 1], [], []>} : vector<16x64xbf16>, vector<64x128xbf16>, vector<16x128xf32> -> vector<16x128xf32>
    %c0_9 = arith.constant 0 : index
    %c0_10 = arith.constant 0 : index
    %11 = vector.load %arg6[%c0_9, %c0_10] : memref<1x128xf32, #tpu.memory_space<vmem>>, vector<1x128xf32>
    %12 = vector.broadcast %11 : vector<1x128xf32> to vector<16x128xf32>
    %13 = arith.addf %10, %12 : vector<16x128xf32>
    %c0_11 = arith.constant 0 : index
    %14 = memref.load %arg1[%c0_11] : memref<2xi32, #tpu.memory_space<smem>>
    %c1 = arith.constant 1 : index
    %15 = memref.load %arg1[%c1] : memref<2xi32, #tpu.memory_space<smem>>
    %c16_i32 = arith.constant 16 : i32
    %16 = arith.muli %arg0, %c16_i32 : i32
    %17 = tpu.iota {dimensions = array<i32: 0>} : vector<16x1xi32>
    %18 = vector.broadcast %16 : i32 to vector<16x1xi32>
    %19 = arith.addi %18, %17 : vector<16x1xi32>
    %20 = vector.broadcast %14 : i32 to vector<16x1xi32>
    %21 = arith.cmpi slt, %19, %20 : vector<16x1xi32>
    %22 = vector.broadcast %15 : i32 to vector<16x1xi32>
    %23 = arith.cmpi slt, %19, %22 : vector<16x1xi32>
    %c1_i32 = arith.constant 1 : i32
    %c2_i32 = arith.constant 2 : i32
    %24 = vector.broadcast %c1_i32 : i32 to vector<16x1xi32>
    %25 = vector.broadcast %c2_i32 : i32 to vector<16x1xi32>
    %26 = arith.select %23, %24, %25 : vector<16x1xi1>, vector<16x1xi32>
    %c0_i32 = arith.constant 0 : i32
    %27 = vector.broadcast %c0_i32 : i32 to vector<16x1xi32>
    %28 = arith.select %21, %27, %26 : vector<16x1xi1>, vector<16x1xi32>
    %29 = tpu.iota {dimensions = array<i32: 1>} : vector<16x128xi32>
    %30 = vector.broadcast %28 : vector<16x1xi32> to vector<16x128xi32>
    %31 = arith.cmpi eq, %29, %30 : vector<16x128xi32>
    %32 = arith.extui %31 : vector<16x128xi1> to vector<16x128xi32>
    %33 = arith.sitofp %32 : vector<16x128xi32> to vector<16x128xf32>
    %34 = arith.addf %13, %33 : vector<16x128xf32>
    %35 = arith.truncf %34 : vector<16x128xf32> to vector<16x128xbf16>
    %c0_12 = arith.constant 0 : index
    %c0_13 = arith.constant 0 : index
    %36 = vector.load %arg7[%c0_12, %c0_13] : memref<16x128xbf16, #tpu.memory_space<vmem>>, vector<16x128xbf16>
    tpu.vector_store %arg7[%c0_12, %c0_13], %35 {strides = array<i32>} : memref<16x128xbf16, #tpu.memory_space<vmem>>, vector<16x128xbf16>,
    return
  }
  func.func @transform_0(%arg0: i32, %arg1: memref<2xi32, #tpu.memory_space<smem>>) -> (i32, i32) {
    %c0_i32 = arith.constant 0 : i32
    %c0_i32_0 = arith.constant 0 : i32
    return %arg0, %c0_i32 : i32, i32
  }
  func.func @transform_1(%arg0: i32, %arg1: memref<2xi32, #tpu.memory_space<smem>>) -> (i32, i32) {
    %c0_i32 = arith.constant 0 : i32
    %c0_i32_0 = arith.constant 0 : i32
    %c0_i32_1 = arith.constant 0 : i32
    return %c0_i32, %c0_i32_0 : i32, i32
  }
  func.func @transform_2(%arg0: i32, %arg1: memref<2xi32, #tpu.memory_space<smem>>) -> (i32, i32) {
    %c0_i32 = arith.constant 0 : i32
    %c0_i32_0 = arith.constant 0 : i32
    %c0_i32_1 = arith.constant 0 : i32
    return %c0_i32, %c0_i32_0 : i32, i32
  }
  func.func @transform_3(%arg0: i32, %arg1: memref<2xi32, #tpu.memory_space<smem>>) -> (i32, i32) {
    %c0_i32 = arith.constant 0 : i32
    %c0_i32_0 = arith.constant 0 : i32
    %c0_i32_1 = arith.constant 0 : i32
    return %c0_i32, %c0_i32_0 : i32, i32
  }
  func.func @transform_4(%arg0: i32, %arg1: memref<2xi32, #tpu.memory_space<smem>>) -> (i32, i32) {
    %c0_i32 = arith.constant 0 : i32
    %c0_i32_0 = arith.constant 0 : i32
    %c0_i32_1 = arith.constant 0 : i32
    return %c0_i32, %c0_i32_0 : i32, i32
  }
  func.func @transform_5(%arg0: i32, %arg1: memref<2xi32, #tpu.memory_space<smem>>) -> (i32, i32) {
    %c0_i32 = arith.constant 0 : i32
    %c0_i32_0 = arith.constant 0 : i32
    return %arg0, %c0_i32 : i32, i32
  }
}

</mosaic_0001>

<bundles_post_ra>
// kernel: tpu_custom_call.1
= control target key start
LH: loop header
LB: loop body
LE: loop exit
PB: predicated region body
PF: predicated region fallthrough
CT: control target
= control target key end

     0   :  { %s405_s24 = smov [#allocation3]   ;;  %s482_s0 = inlined_call_operand.hbm [shape: s32[2], index: 0, kind: input, shape index: {}]   ;;  %s483_s1 = inlined_call_operand.hbm [shape: bf16[16,32], index: 1, kind: input, shape index: {}]   ;;  %s484_s2 = inlined_call_operand.hbm [shape: bf16[32,64], index: 2, kind: input, shape index: {}]   ;;  %s485_s3 = inlined_call_operand.vmem [shape: f32[1,64], index: 3, kind: input, shape index: {}]   ;;  %s486_s4 = inlined_call_operand.hbm [shape: bf16[64,128], index: 4, kind: input, shape index: {}]   ;;  %s487_s5 = inlined_call_operand.vmem [shape: f32[1,128], index: 5, kind: input, shape index: {}]   ;;  %s488_s6 = inlined_call_operand.hbm [shape: bf16[16,128], index: 6, kind: output, shape index: {}]  }
   0x1   :  { %s12_s23 = sshll.u32 %s482_s0, 4  ;;  %s13_s23 = int_to_ptr.hbm [resolvable:$true] %s12_s23 }
   0x2   :  { %15 = dma.hbm_to_smem %s13_s23, 16, %s405_s24, [#allocation2] }
   0x3   :  { %397 = dma.done.wait [#allocation2], 16 }
   0x4   :  { %398 = vsyncadd [#allocation2], 4294967280 }
   0x5   :  { %18 = sfence }
   0x6   :  { %19 = vsyncpa [#allocation5], 0 }
   0x7   :  { %20 = vsyncpa [#allocation8], 0 }
   0x8   :  { %21 = vsyncpa [#allocation6], 0  ;;  %s39_s27 = sshll.u32 %s484_s2, 4  ;;  %s406_s28 = smov [#allocation7]   ;;  %s40_s27 = int_to_ptr.hbm [resolvable:$true] %s39_s27 }
   0x9   :  { %s41_s29 = sshll.u32 %s406_s28, 4  ;;  %s26_s0 = sshll.u32 %s483_s1, 4  ;;  %s42_s29 = int_to_ptr.vmem [resolvable:$true] %s41_s29  ;;  %s27_s0 = int_to_ptr.hbm [resolvable:$true] %s26_s0 }
   0xa   :  { %s407_s8 = smov 64   ;;  %s408_s9 = smov 4  }
   0xb   :  { %47 = dma.hbm_to_vmem [thread:$0]  %s40_s27, 256, %s42_s29, [#allocation8], %s407_s8, %s407_s8, %s408_s9  }
   0xc   :  { %s409_s10 = smov [#allocation4]   ;;  %s54_s2 = sshll.u32 %s486_s4, 4  ;;  %s55_s2 = int_to_ptr.hbm [resolvable:$true] %s54_s2 }
   0xd   :  { %s28_s11 = sshll.u32 %s409_s10, 4  ;;  %s410_s1 = smov [#allocation9]   ;;  %s29_s11 = int_to_ptr.vmem [resolvable:$true] %s28_s11 }
   0xe   :  { %34 = dma.hbm_to_vmem [thread:$0]  %s27_s0, 128, %s29_s11, [#allocation5], %s407_s8, %s407_s8, %s408_s9  }
   0xf   :  { %s56_s14 = sshll.u32 %s410_s1, 4  ;;  %s57_s14 = int_to_ptr.vmem [resolvable:$true] %s56_s14 }
  0x10   :  { %62 = dma.hbm_to_vmem [thread:$0]  %s55_s2, 512, %s57_s14, [#allocation8], %s407_s8, %s407_s8, %s408_s9  }
  0x11   :  { %399 = dma.done.wait [#allocation5], 128  }
  0x12   :  { %400 = vsyncadd [#allocation5], 4294967168 }
  0x13   :  { %401 = dma.done.wait [#allocation8], 768  }
  0x14   :  { %402 = vsyncadd [#allocation8], 4294966528  ;;  %v268_v0 = vld [vmem:[#allocation7 + $0x8] sm:$0xff]  ;;  %v267_v1 = vld [vmem:[#allocation7] sm:$0xff]  ;;  %vm105_vm0 = vcmask 261120   ;;  %vm162_vm1 = vcmask 523264   ;;  %v183_v15 = vlaneseq }
  0x15   :  { %115 = vmatpush.bf16.msra.mxu0 %v268_v0  ;;  %v266_v2 = vld [vmem:[#allocation4] sm:$0xff]  ;;  %v272_v3 = vld [vmem:[#allocation9 + $0x18] sm:$0xff]  ;;  %v271_v4 = vld [vmem:[#allocation9 + $0x10] sm:$0xff]  ;;  %s263_s16 = sld [smem:[#allocation3 + $0x1]]  ;;  %v411_v20 = vmov 2   ;;  %v412_v29 = vmov 0.0  }
  0x16   :  { %170 = vmatpush.bf16.msra.mxu1 %v272_v3  ;;  %v270_v5 = vld [vmem:[#allocation9 + $0x8] sm:$0xff]  ;;  %v269_v6 = vld [vmem:[#allocation9] sm:$0xff]  ;;  %s180_s17 = sld [smem:[#allocation3]]  ;;  %v184_v16 = vshrl.u32 %v183_v15, 7  ;;  %v200_v24 = vand.u32 127, %v183_v15  ;;  %s413_s19 = smov [#allocation10]  }
  0x17   :  { %v287_v8 = vld [vmem:[%s485_s3] ss:$0 sm:$0xff]  ;;  %s217_s20 = sshll.u32 %s413_s19, 4  ;;  %s219_s23 = sshll.u32 %s488_s6, 4  ;;  %s218_s20 = int_to_ptr.vmem [resolvable:$true] %s217_s20  ;;  %s220_s23 = int_to_ptr.hbm [resolvable:$true] %s219_s23 }
  0x18   :  { %v185_v17 = vadd.s32 8, %v184_v16  ;;  %v288_v27 = vld [vmem:[%s487_s5] ss:$0 sm:$0xff] }
  0x19   :  { %116 = vmatpush.bf16.msra.mxu0 %v267_v1 }
  0x1a   :  { %171 = vmatpush.bf16.msra.mxu1 %v271_v4 }
  0x1b   :  { %v192_v18 = vstv %s263_s16 }
  0x1c   :  { %245 = vmatmul.msk.bf16.vlgmr.msra.gmra.mxu0 %vm105_vm0, %v266_v2  ;;  %v189_v19 = vstv %s180_s17  ;;  %vm193_vm2 = vcmp.lt.s32.totalorder %v184_v16, %v192_v18  ;;  %vm194_vm3 = vcmp.lt.s32.totalorder %v185_v17, %v192_v18 }
  0x1d   :  { %vm190_vm4 = vcmp.lt.s32.totalorder %v184_v16, %v189_v19  ;;  %v195_v21 = vsel %vm193_vm2, 1, %v411_v20  ;;  %vm191_vm5 = vcmp.lt.s32.totalorder %v185_v17, %v189_v19  ;;  %v196_v22 = vsel %vm194_vm3, 1, %v411_v20 }
  0x1e   :  { %172 = vmatpush.bf16.msra.mxu1 %v270_v5  ;;  %v197_v25 = vsel %vm190_vm4, 0, %v195_v21  ;;  %v198_v26 = vsel %vm191_vm5, 0, %v196_v22 }
  0x1f   :  { %vm201_vm6 = vcmp.eq.s32.totalorder %v200_v24, %v197_v25  ;;  %vm202_vm7 = vcmp.eq.s32.totalorder %v200_v24, %v198_v26 }
  0x20   :  { %v264_v30 = vsel %vm201_vm6, 1.0, %v412_v29  ;;  %v265_v32 = vsel %vm202_vm7, 1.0, %v412_v29 }
  0x22   :  { %173 = vmatpush.bf16.msra.mxu1 %v269_v6 }
  0x99   :  { %v118_v7 = vpop.f32.mrf.mxu0 }
  0x9a   :  { %v119_v9 = vadd.f32 %v287_v8, %v118_v7 }
  0x9c   :  { %v123_v12 = vmax.f32 %v119_v9, 0.0 }
  0xa1   :  { %v120_v10 = vpop.f32.mrf.mxu0 }
  0xa2   :  { %v121_v11 = vadd.f32 %v287_v8, %v120_v10 }
  0xa4   :  { %v124_v13 = vmax.f32 %v121_v11, 0.0 }
  0xa6   :  { %v125_v14 = vpack.c.bf16 %v124_v13, %v123_v12 }
  0xa8   :  { %262 = vmatmul.msk.bf16.vlgmr.msra.gmra.mxu1 %vm162_vm1, %v125_v14 }
 0x125   :  { %v175_v23 = vpop.f32.mrf.mxu1 }
 0x126   :  { %v176_v28 = vadd.f32 %v288_v27, %v175_v23 }
 0x128   :  { %v207_v34 = vadd.f32 %v264_v30, %v176_v28 }
 0x12d   :  { %v177_v31 = vpop.f32.mrf.mxu1 }
 0x12e   :  { %v178_v33 = vadd.f32 %v288_v27, %v177_v31 }
 0x130   :  { %v208_v35 = vadd.f32 %v265_v32, %v178_v33 }
 0x132   :  { %v276_v36 = vpack.c.bf16 %v208_v35, %v207_v34 }
 0x134   :  { %277 = vst [vmem:[#allocation10] sm:$0xff] %v276_v36  }
 0x135   :  { %225 = dma.vmem_to_hbm [thread:$0]  %s218_s20, 128, %s220_s23, [#allocation6], %s407_s8, %s407_s8, %s408_s9  }
 0x136   :  { %403 = dma.done.wait [#allocation6], 128  }
 0x137   :  { %404 = vsyncadd [#allocation6], 4294967168 }
 0x138   :  { %230 = vsyncpa [#allocation5], 1 }
 0x139   :  { %231 = vsyncpa [#allocation8], 1 }
 0x13a   :  { %232 = vsyncpa [#allocation6], 1 }

</bundles_post_ra>
